<compile_context>
chip_gen: v5e
topology: v5e:2x2
jax: 0.10.0
libtpu: 0.0.40
codegen_flags: <defaults>
</compile_context>

<pallas_src>
import jax
import jax.numpy as jnp
from jax.experimental import pallas as pl
from jax.experimental.pallas import tpu as pltpu

LANES = 128  # TPU vreg lane width


def _cdiv(a, b):
    return -(-a // b)


def _round_up(n, m):
    return (n + m - 1) // m * m


def _mlp_kernel(x_ref, w1_ref, b1_ref, w2_ref, b2_ref, o_ref):
    # x_ref : [T, 128]  caller dtype (f32 here); 4 logical rows packed per row
    # w1_ref: [128, 256] bf16  block-diagonal replication of the 32x64 weight
    # b1_ref: [1,   256] f32
    # w2_ref: [256, 128] bf16  block-diagonal replication of the 64x32 weight
    # b2_ref: [1,   128] f32
    # o_ref : [T, 128]  packed, lane-dense output (caller/out dtype)
    x = x_ref[...].astype(w1_ref.dtype)          # f32 -> bf16 folded into kernel
    h = jnp.dot(x, w1_ref[...], preferred_element_type=jnp.float32) + b1_ref[...]
    h = jnp.maximum(h, 0.0)                      # bias + ReLU in f32 (v5e-safe)
    y = jnp.dot(h.astype(w2_ref.dtype), w2_ref[...],
                preferred_element_type=jnp.float32) + b2_ref[...]
    o_ref[...] = y.astype(o_ref.dtype)


def _module_forward(x_packed, w1p, b1p, w2p, b2p, *, out_dtype, tile_rows):
    """Fused (Linear -> ReLU -> Linear) over a packed lane-dense [Mp,128] slab."""
    mp, lanes = x_packed.shape
    assert lanes == LANES
    dp = w1p.shape[1]
    assert mp % tile_rows == 0
    grid = mp // tile_rows

    flops = 2 * mp * (LANES * dp + dp * LANES)
    bytes_accessed = int(
        x_packed.size * x_packed.dtype.itemsize
        + w1p.size * w1p.dtype.itemsize + w2p.size * w2p.dtype.itemsize
        + b1p.size * 4 + b2p.size * 4
        + mp * LANES * jnp.dtype(out_dtype).itemsize)

    return pl.pallas_call(
        _mlp_kernel,
        out_shape=jax.ShapeDtypeStruct((mp, LANES), out_dtype),
        grid=(grid,),
        in_specs=[
            # x tiles stream through the pipeline (tile i+1 DMA overlaps compute i).
            pl.BlockSpec((tile_rows, LANES), lambda i: (i, 0)),
            # Weights / biases: same block every step -> stay VMEM-resident.
            pl.BlockSpec((LANES, dp), lambda i: (0, 0)),
            pl.BlockSpec((1, dp), lambda i: (0, 0)),
            pl.BlockSpec((dp, LANES), lambda i: (0, 0)),
            pl.BlockSpec((1, LANES), lambda i: (0, 0)),
        ],
        out_specs=pl.BlockSpec((tile_rows, LANES), lambda i: (i, 0)),
        compiler_params=pltpu.CompilerParams(
            dimension_semantics=("parallel",),     # >=2 grid steps -> both v7x TCs
            vmem_limit_bytes=48 * 1024 * 1024,     # headroom under v7x 64 MiB/TC
        ),
        cost_estimate=pl.CostEstimate(
            flops=flops, transcendentals=0, bytes_accessed=bytes_accessed),
    )(x_packed, w1p, b1p, w2p, b2p)


class WrappedModel:
    """JAX equivalent of the PyTorch WrappedModel: forward(x) = module(x)."""

    def __init__(self, module):
        self.module = module

    def __call__(self, x):
        return self.module(x)


def make_inner_module(hidden=32, inner=64, dtype=jnp.float32,
                      compute_dtype=jnp.bfloat16, max_tile_rows=2048,
                      out_dtype=None):
    """Deterministically initialized 2-layer MLP acting on the last dim."""
    assert LANES % hidden == 0, "row packing requires hidden to divide 128"
    pack = LANES // hidden  # logical rows packed per 128-lane physical row

    key = jax.random.PRNGKey(0)
    k1, k2, k3, k4 = jax.random.split(key, 4)
    w1 = jax.random.normal(k1, (hidden, inner), dtype) * (1.0 / jnp.sqrt(hidden))
    b1 = jax.random.normal(k2, (1, inner), dtype) * 0.01
    w2 = jax.random.normal(k3, (inner, hidden), dtype) * (1.0 / jnp.sqrt(inner))
    b2 = jax.random.normal(k4, (1, hidden), dtype) * 0.01

    # Block-diagonal replication: packed [Mp,128] @ kron(I_pack, w1) applies the
    # original 32x64 layer independently to each of the `pack` row groups.
    eye = jnp.eye(pack, dtype=dtype)
    w1p = jnp.kron(eye, w1).astype(compute_dtype)       # [128, pack*inner]
    w2p = jnp.kron(eye, w2).astype(compute_dtype)       # [pack*inner, 128]
    b1p = jnp.tile(b1, (1, pack)).astype(jnp.float32)   # biases stay f32
    b2p = jnp.tile(b2, (1, pack)).astype(jnp.float32)

    def module(x):
        # x: [B, S, H] -> packed lane-dense [Mp, 128] -> kernel -> unpack.
        # The [m,H] -> [m/pack,128] reshape is a free row-major view; only a
        # (small, equalized) tail pad ever copies, and the bf16 cast happens
        # inside the kernel, so the input is read from HBM exactly once.
        B, S, H = x.shape
        m = B * S
        mp = _cdiv(m, pack)

        # Equalized tiles: >=2 (even) grid steps for the v7x two-TC split,
        # each tile a multiple of 16 rows, padding bounded to <16 packed
        # rows per tile instead of up to a whole fixed-size tile.
        num_tiles = max(2, _cdiv(mp, max_tile_rows))
        if num_tiles % 2:
            num_tiles += 1
        tile = _round_up(_cdiv(mp, num_tiles), 16)
        mp_pad = tile * num_tiles
        m_pad = mp_pad * pack

        x2d = x.reshape(m, H)
        if m_pad != m:
            x2d = jnp.pad(x2d, ((0, m_pad - m), (0, 0)))
        x_packed = x2d.reshape(mp_pad, LANES)            # caller dtype, no cast

        odt = x.dtype if out_dtype is None else out_dtype
        y_packed = _module_forward(x_packed, w1p, b1p, w2p, b2p,
                                   out_dtype=odt, tile_rows=tile)
        y2d = y_packed.reshape(m_pad, H)[:m]
        return y2d.reshape(B, S, H)

    return module


if __name__ == "__main__":
    B, S, H, D = 2, 8, 32, 64
    key = jax.random.PRNGKey(0)
    x = jax.random.normal(key, (B, S, H), jnp.float32)

    model = WrappedModel(make_inner_module(hidden=H, inner=D))
    y = jax.block_until_ready(model(x))

    assert y.shape == (B, S, H), y.shape
    assert y.dtype == jnp.float32, y.dtype

    # Pure-JAX reference mirroring the kernel's bf16 casts (same weight init).
    k1, k2, k3, k4 = jax.random.split(jax.random.PRNGKey(0), 4)
    w1 = jax.random.normal(k1, (H, D), jnp.float32) * (1.0 / jnp.sqrt(H))
    b1 = jax.random.normal(k2, (1, D), jnp.float32) * 0.01
    w2 = jax.random.normal(k3, (D, H), jnp.float32) * (1.0 / jnp.sqrt(D))
    b2 = jax.random.normal(k4, (1, H), jnp.float32) * 0.01
    xb = x.reshape(-1, H).astype(jnp.bfloat16).astype(jnp.float32)
    w1b = w1.astype(jnp.bfloat16).astype(jnp.float32)
    w2b = w2.astype(jnp.bfloat16).astype(jnp.float32)
    h_ref = jnp.maximum(xb @ w1b + b1, 0.0)
    y_ref = (h_ref.astype(jnp.bfloat16).astype(jnp.float32) @ w2b + b2
             ).reshape(B, S, H)
    assert jnp.allclose(y, y_ref, atol=2e-2, rtol=2e-2), \
        float(jnp.max(jnp.abs(y - y_ref)))

    print("KERNEL_OK")
</pallas_src>

<mosaic_0001>
module attributes {stable_mosaic.version = 11 : i64} {
  func.func @_mlp_kernel(%arg0: i32, %arg1: memref<16x128xf32, #tpu.memory_space<vmem>>, %arg2: memref<128x256xbf16, #tpu.memory_space<vmem>>, %arg3: memref<1x256xf32, #tpu.memory_space<vmem>>, %arg4: memref<256x128xbf16, #tpu.memory_space<vmem>>, %arg5: memref<1x128xf32, #tpu.memory_space<vmem>>, %arg6: memref<16x128xf32, #tpu.memory_space<vmem>>) attributes {dimension_semantics = [#tpu.dimension_semantics<parallel>], iteration_bounds = array<i64: 2>, scalar_prefetch = 0 : i64, scratch_operands = 0 : i64, tpu.core_type = #tpu.core_type<tc>, window_params = [{transform_indices = @transform_0, window_bounds = array<i64: 16, 128>}, {pipeline_mode = #tpu.pipeline_mode<synchronous>, transform_indices = @transform_1, window_bounds = array<i64: 128, 256>}, {pipeline_mode = #tpu.pipeline_mode<synchronous>, transform_indices = @transform_2, window_bounds = array<i64: 1, 256>}, {pipeline_mode = #tpu.pipeline_mode<synchronous>, transform_indices = @transform_3, window_bounds = array<i64: 256, 128>}, {pipeline_mode = #tpu.pipeline_mode<synchronous>, transform_indices = @transform_4, window_bounds = array<i64: 1, 128>}, {transform_indices = @transform_5, window_bounds = array<i64: 16, 128>}]} {
    %c0 = arith.constant 0 : index
    %c0_0 = arith.constant 0 : index
    %0 = vector.load %arg1[%c0, %c0_0] : memref<16x128xf32, #tpu.memory_space<vmem>>, vector<16x128xf32>
    %1 = arith.truncf %0 : vector<16x128xf32> to vector<16x128xbf16>
    %c0_1 = arith.constant 0 : index
    %c0_2 = arith.constant 0 : index
    %2 = vector.load %arg2[%c0_1, %c0_2] : memref<128x256xbf16, #tpu.memory_space<vmem>>, vector<128x256xbf16>
    %cst = arith.constant dense<0.000000e+00> : vector<16x256xf32>
    %3 = tpu.matmul %1, %2, %cst {dimension_numbers = #tpu.dot_dimension_numbers<[1], [0], [0], [1], [0, 0, 1, 1], [], []>} : vector<16x128xbf16>, vector<128x256xbf16>, vector<16x256xf32> -> vector<16x256xf32>
    %c0_3 = arith.constant 0 : index
    %c0_4 = arith.constant 0 : index
    %4 = vector.load %arg3[%c0_3, %c0_4] : memref<1x256xf32, #tpu.memory_space<vmem>>, vector<1x256xf32>
    %5 = vector.broadcast %4 : vector<1x256xf32> to vector<16x256xf32>
    %6 = arith.addf %3, %5 : vector<16x256xf32>
    %cst_5 = arith.constant 0.000000e+00 : f32
    %7 = vector.broadcast %cst_5 : f32 to vector<16x256xf32>
    %8 = arith.maximumf %6, %7 : vector<16x256xf32>
    %9 = arith.truncf %8 : vector<16x256xf32> to vector<16x256xbf16>
    %c0_6 = arith.constant 0 : index
    %c0_7 = arith.constant 0 : index
    %10 = vector.load %arg4[%c0_6, %c0_7] : memref<256x128xbf16, #tpu.memory_space<vmem>>, vector<256x128xbf16>
    %cst_8 = arith.constant dense<0.000000e+00> : vector<16x128xf32>
    %11 = tpu.matmul %9, %10, %cst_8 {dimension_numbers = #tpu.dot_dimension_numbers<[1], [0], [0], [1], [0, 0, 1, 1], [], []>} : vector<16x256xbf16>, vector<256x128xbf16>, vector<16x128xf32> -> vector<16x128xf32>
    %c0_9 = arith.constant 0 : index
    %c0_10 = arith.constant 0 : index
    %12 = vector.load %arg5[%c0_9, %c0_10] : memref<1x128xf32, #tpu.memory_space<vmem>>, vector<1x128xf32>
    %13 = vector.broadcast %12 : vector<1x128xf32> to vector<16x128xf32>
    %14 = arith.addf %11, %13 : vector<16x128xf32>
    %c0_11 = arith.constant 0 : index
    %c0_12 = arith.constant 0 : index
    %15 = vector.load %arg6[%c0_11, %c0_12] : memref<16x128xf32, #tpu.memory_space<vmem>>, vector<16x128xf32>
    tpu.vector_store %arg6[%c0_11, %c0_12], %14 {strides = array<i32>} : memref<16x128xf32, #tpu.memory_space<vmem>>, vector<16x128xf32>,
    return
  }
  func.func @transform_0(%arg0: i32) -> (i32, i32) {
    %c0_i32 = arith.constant 0 : i32
    %c0_i32_0 = arith.constant 0 : i32
    return %arg0, %c0_i32 : i32, i32
  }
  func.func @transform_1(%arg0: i32) -> (i32, i32) {
    %c0_i32 = arith.constant 0 : i32
    %c0_i32_0 = arith.constant 0 : i32
    %c0_i32_1 = arith.constant 0 : i32
    return %c0_i32, %c0_i32_0 : i32, i32
  }
  func.func @transform_2(%arg0: i32) -> (i32, i32) {
    %c0_i32 = arith.constant 0 : i32
    %c0_i32_0 = arith.constant 0 : i32
    %c0_i32_1 = arith.constant 0 : i32
    return %c0_i32, %c0_i32_0 : i32, i32
  }
  func.func @transform_3(%arg0: i32) -> (i32, i32) {
    %c0_i32 = arith.constant 0 : i32
    %c0_i32_0 = arith.constant 0 : i32
    %c0_i32_1 = arith.constant 0 : i32
    return %c0_i32, %c0_i32_0 : i32, i32
  }
  func.func @transform_4(%arg0: i32) -> (i32, i32) {
    %c0_i32 = arith.constant 0 : i32
    %c0_i32_0 = arith.constant 0 : i32
    %c0_i32_1 = arith.constant 0 : i32
    return %c0_i32, %c0_i32_0 : i32, i32
  }
  func.func @transform_5(%arg0: i32) -> (i32, i32) {
    %c0_i32 = arith.constant 0 : i32
    %c0_i32_0 = arith.constant 0 : i32
    return %arg0, %c0_i32 : i32, i32
  }
}

</mosaic_0001>

<bundles_post_ra>
// kernel: tpu_custom_call.1
= control target key start
LH: loop header
LB: loop body
LE: loop exit
PB: predicated region body
PF: predicated region fallthrough
CT: control target
= control target key end

     0   :  { %10 = vsyncpa [#allocation3], 0  ;;  %s1390_s0 = inlined_call_operand.hbm [shape: f32[32,128], index: 0, kind: input, shape index: {}]   ;;  %s1391_s1 = inlined_call_operand.hbm [shape: bf16[128,256], index: 1, kind: input, shape index: {}]   ;;  %s1392_s2 = inlined_call_operand.hbm [shape: f32[1,256], index: 2, kind: input, shape index: {}]   ;;  %s1393_s3 = inlined_call_operand.hbm [shape: bf16[256,128], index: 3, kind: input, shape index: {}]   ;;  %s1394_s4 = inlined_call_operand.vmem [shape: f32[1,128], index: 4, kind: input, shape index: {}]   ;;  %s1395_s5 = inlined_call_operand.hbm [shape: f32[32,128], index: 5, kind: output, shape index: {}]  }
   0x1   :  { %12 = vsyncpa [#allocation3 + $0x1], 0 }
   0x2   :  { %13 = vsyncpa [#allocation6], 0 }
   0x3   :  { %14 = vsyncpa [#allocation9], 0 }
   0x4   :  { %15 = vsyncpa [#allocation4], 0 }
   0x5   :  { %17 = vsyncpa [#allocation4 + $0x1], 0  ;;  %s1215_s18 = smov 0   ;;  %s1217_s19 = smov 0  }
   0x6   :  { %s1219_s20 = smov 0   ;;  %s1221_s21 = smov 0  }
   0x7 LB: > { %s1236_s22 = sadd.s32 4294967295, %s1174_s21   ;;  %s714_s23 = sadd.s32 4294967294, %s1174_s21   ;;  %s1174_s21 = sphi %s1221_s21, %s1408_s21   ;;  %s1170_s20 = sphi %s1219_s20, %s1407_s20   ;;  %s1166_s19 = sphi %s1217_s19, %s1406_s19   ;;  %s1162_s18 = sphi %s1215_s18, %s1405_s18  }
   0x8   : > { %p43_p0 = scmp.ne.s32.totalorder %s1166_s19, %s1162_s18  ;;  %p44_p1 = scmp.eq.s32.totalorder %s1236_s22, 0 }
   0x9   : > { %p151_p2 = scmp.eq.s32.totalorder %s1236_s22, 1  ;;  %p157_p3 = scmp.eq.s32.totalorder %s714_s23, 1 }
   0xa   : > { %p1245_p4 = por %p44_p1, %p43_p0  ;;  %p715_p5 = scmp.ge.s32.totalorder %s1174_s21, 1 }
   0xb   : > { %p1250_p6 = por %p157_p3, %p43_p0  ;;  %p164_p7 = scmp.lt.s32.totalorder %s1174_s21, 3 }
   0xc   : > { %s175_s28 = sshll.u32 %s1391_s1, 4  ;;  %s1176_s30 = smov [#allocation5]   ;;  %s176_s28 = int_to_ptr.hbm [resolvable:$true] %s175_s28 }
   0xd   : > { %p1258_p8 = pnand %p715_p5, %p164_p7  ;;  %s177_s6 = sshll.u32 %s1176_s30, 4  ;;  %s178_s6 = int_to_ptr.vmem [resolvable:$true] %s177_s6 }
   0xe   : > { %s190_s10 = sshll.u32 %s1392_s2, 4  ;;  %s1396_s11 = smov 128   ;;  %s191_s10 = int_to_ptr.hbm [resolvable:$true] %s190_s10 }
   0xf   : > { %p912_p9 = pneg %p1258_p8  ;;  %s1178_s12 = smov 8  }
  0x10   : > { %s1179_s13 = smov [#allocation7]   ;;  %s201_s17 = sshll.u32 %s1393_s3, 4  ;;  %s202_s17 = int_to_ptr.hbm [resolvable:$true] %s201_s17 }
  0x11   : > { %p1266_p10 = pnand %p912_p9, %p44_p1  ;;  %s192_s14 = sshll.u32 %s1179_s13, 4  ;;  %s193_s14 = int_to_ptr.vmem [resolvable:$true] %s192_s14 }
  0x12   : > { %s1180_s23 = smov [#allocation8]   ;;  %s1181_s27 = smov 64  }
  0x13   : > { %915 = dma.hbm_to_vmem [thread:$0]  (!%p1266_p10), %s176_s28, 2048, %s178_s6, [#allocation6], %s1396_s11, %s1396_s11, %s1178_s12  }
  0x14   : > { %918 = dma.hbm_to_vmem [thread:$0]  (!%p1266_p10), %s191_s10, 32, %s193_s14, [#allocation6]  }
  0x15   : > { %s203_s26 = sshll.u32 %s1180_s23, 4  ;;  %s1182_s28 = smov 4   ;;  %s204_s26 = int_to_ptr.vmem [resolvable:$true] %s203_s26 }
  0x16   : > { %921 = dma.hbm_to_vmem [thread:$0]  (!%p1266_p10), %s202_s17, 2048, %s204_s26, [#allocation9], %s1181_s27, %s1181_s27, %s1182_s28  }
  0x17   : > { %s1287_s30 = sadd.s32 1, %s1174_s21   ;;  %s30_s8 = sadd.s32 1, %s1170_s20 }
  0x18   : > { %s27_s6 = ssub.s32 %s1174_s21, %s1287_s30  ;;  %p37_p13 = scmp.ne.s32.totalorder %s1170_s20, %s1166_s19 }
  0x19   : > { %p28_p12 = scmp.eq.s32.totalorder %s27_s6, 0  ;;  %p38_p0 = scmp.eq.s32.totalorder %s1174_s21, 0 }
  0x1a   : > { %p1300_p3 = por %p151_p2, %p37_p13  ;;  %p933_p5 = scmp.lt.s32.totalorder %s1174_s21, 2 }
  0x1b   : > { %s1296_s9 = scalar_select %p28_p12, %s1170_s20, %s30_s8  }
  0x1c   : > { %s220_s13 = sand.u32 1, %s1170_s20   ;;  %s862_s14 = sshll.u32 %s1174_s21, 4 }
  0x1d   : > { %p39_p7 = por %p38_p0, %p37_p13  ;;  %s720_s7 = sshll.u32 %s220_s13, 4 }
  0x1e   : > { %s229_s17 = scalar_lea.hbm %s1390_s0, %s862_s14  ;;  %s224_s26 = scalar_lea.vmem [#allocation2], %s720_s7 }
  0x1f   : > { %s230_s23 = sshll.u32 %s229_s17, 4  ;;  %s232_s27 = sshll.u32 %s224_s26, 4  ;;  %s231_s23 = int_to_ptr.hbm [resolvable:$true] %s230_s23  ;;  %s233_s27 = int_to_ptr.vmem [resolvable:$true] %s232_s27 }
  0x20   : > { %p1310_p9 = pnand %p933_p5, %p39_p7  ;;  %s221_s6 = scalar_lea.sflag [#allocation3], %s220_s13 }
  0x21   : > { %s1070_s8 = sshra.s32 %s231_s23, 4  ;;  %s1077_s7 = scalar_lea.hbm %s1390_s0, 32  ;;  %s1071_s8 = int_to_ptr.hbm [resolvable:$true] %s1070_s8 }
  0x22   : > { %s1072_s11 = scalar_lea.hbm %s1071_s8, 16  ;;  %p1074_p10 = pneg %p1310_p9 }
  0x23   : > { %p1073_p2 = scmp.ne.s32.totalorder %s1071_s8, %s1072_s11  ;;  %p1078_p0 = scmp.lt.s32.totalorder %s1071_s8, %s1390_s0 }
  0x24   : > { %p1079_p5 = scmp.lt.s32.totalorder %s1077_s7, %s1072_s11 }
  0x25   : > { %p1075_p12 = pnand %p1074_p10, %p1073_p2 }
  0x26   : > { %p1080_p7 = por %p1079_p5, %p1078_p0 }
  0x27   : > { %p1076_p13 = pneg %p1075_p12 }
  0x29   : > { %p1081_p11 = pnand %p1080_p7, %p1076_p13 }
  0x2b   : > { %1084 = shalt.err (!%p1081_p11)
}
  0x2c   : > { %s1403_s13 = smov 128   ;;  %244 = sbr.rel (%p1258_p8) target bundleno = 376 (0x178), region = 40 }
  0x2d   : > { %925 = dma.hbm_to_vmem [thread:$0]  (!%p1310_p9), %s231_s23, 256, %s233_s27, %s221_s6, %s1403_s13, %s1403_s13, %s1178_s12  }
  0x2e   : > { %s1330_s26 = sand.u32 (!%p1258_p8), 1, %s1166_s19  }
  0x2f   : > { %s724_s11 = sshll.u32 (!%p1258_p8), %s1330_s26, 4  ;;  %s247_s8 = scalar_lea.sflag (!%p1258_p8), [#allocation3], %s1330_s26 }
  0x30   : > { %s1336_s14 = scalar_lea.vmem (!%p1258_p8), [#allocation2], %s724_s11 }
  0x31   : > { %1145 = dma.done.wait (%p1245_p4), %s247_s8, 256  }
  0x32   : > { %1147 = vsyncadd (%p1245_p4), %s247_s8, 4294967040 }
  0x33   : > { %1149 = dma.done.wait (%p44_p1), [#allocation6], 2080  }
  0x34   : > { %1151 = vsyncadd (%p44_p1), [#allocation6], 4294965216 }
  0x35   : > { %1153 = dma.done.wait (%p44_p1), [#allocation9], 2048  }
  0x36   : > { %1155 = vsyncadd (%p44_p1), [#allocation9], 4294965248  ;;  %v787_v0 = vld [vmem:[#allocation5 + $0x70] sm:$0xf]  ;;  %v878_v1 = vld [vmem:[#allocation5 + $0x74] sm:$0xf0] }
  0x37   : > { %v877_v2 = vld [vmem:[#allocation5 + $0x74] sm:$0xf]  ;;  %v788_v3 = vor.u32 %v878_v1, %v787_v0  ;;  %v789_v4 = vld [vmem:[#allocation5 + $0x78] sm:$0xf0]  ;;  %v779_v5 = vld [vmem:[#allocation5 + $0x60] sm:$0xf] }
  0x38   : > { %v876_v6 = vld [vmem:[#allocation5 + $0x64] sm:$0xf0]  ;;  %v792_v7 = vor.u32 %v877_v2, %v789_v4  ;;  %v875_v8 = vld [vmem:[#allocation5 + $0x64] sm:$0xf]  ;;  %v781_v9 = vld [vmem:[#allocation5 + $0x68] sm:$0xf0] }
  0x39   : > { %400 = vmatpush.bf16.msra.mxu0 %v788_v3  ;;  %v780_v10 = vor.u32 %v876_v6, %v779_v5  ;;  %v784_v11 = vor.u32 %v875_v8, %v781_v9  ;;  %v771_v12 = vld [vmem:[#allocation5 + $0x50] sm:$0xf]  ;;  %v874_v13 = vld [vmem:[#allocation5 + $0x54] sm:$0xf0]  ;;  %v873_v14 = vld [vmem:[#allocation5 + $0x54] sm:$0xf] }
  0x3a   : > { %414 = vmatpush.bf16.msra.mxu1 %v792_v7  ;;  %v773_v15 = vld [vmem:[#allocation5 + $0x58] sm:$0xf0]  ;;  %v772_v16 = vor.u32 %v874_v13, %v771_v12  ;;  %v763_v18 = vld [vmem:[#allocation5 + $0x40] sm:$0xf]  ;;  %v872_v19 = vld [vmem:[#allocation5 + $0x44] sm:$0xf0] }
  0x3b   : > { %v776_v17 = vor.u32 %v873_v14, %v773_v15  ;;  %v871_v20 = vld [vmem:[#allocation5 + $0x44] sm:$0xf]  ;;  %v765_v21 = vld [vmem:[#allocation5 + $0x48] sm:$0xf0]  ;;  %v764_v22 = vor.u32 %v872_v19, %v763_v18  ;;  %v886_v23 = vld [vmem:[#allocation8 + $0x38] sm:$0xff]  ;;  %s895_s12 = sshll.u32 %s1236_s22, 4 }
  0x3c   : > { %v894_v24 = vld [vmem:[#allocation8 + $0x78] sm:$0xff]  ;;  %v768_v25 = vor.u32 %v871_v20, %v765_v21  ;;  %v755_v26 = vld [vmem:[#allocation5 + $0x30] sm:$0xf]  ;;  %v869_v28 = vld [vmem:[#allocation5 + $0x34] sm:$0xf]  ;;  %566 = vmatpush.bf16.msra.mxu2 %v886_v23  ;;  %s608_s28 = scalar_lea.hbm %s1395_s5, %s895_s12  ;;  %s292_s6 = scalar_lea.vmem [#allocation10], %s724_s11 }
  0x3d   : > { %401 = vmatpush.bf16.msra.mxu0 %v780_v10  ;;  %v870_v27 = vld [vmem:[#allocation5 + $0x34] sm:$0xf0]  ;;  %v757_v29 = vld [vmem:[#allocation5 + $0x38] sm:$0xf0]  ;;  %580 = vmatpush.bf16.msra.mxu3 %v894_v24  ;;  %v747_v34 = vld [vmem:[#allocation5 + $0x20] sm:$0xf] }
  0x3e   : > { %415 = vmatpush.bf16.msra.mxu1 %v784_v11  ;;  %v885_v30 = vld [vmem:[#allocation8 + $0x30] sm:$0xff]  ;;  %v756_v32 = vor.u32 %v870_v27, %v755_v26  ;;  %v760_v33 = vor.u32 %v869_v28, %v757_v29  ;;  %v868_v35 = vld [vmem:[#allocation5 + $0x24] sm:$0xf0]  ;;  %v867_v36 = vld [vmem:[#allocation5 + $0x24] sm:$0xf]  ;;  %s609_s15 = sshll.u32 %s292_s6, 4  ;;  %s610_s15 = int_to_ptr.vmem [resolvable:$true] %s609_s15 }
  0x3f   : > { %v893_v31 = vld [vmem:[#allocation8 + $0x70] sm:$0xff]  ;;  %v749_v37 = vld [vmem:[#allocation5 + $0x28] sm:$0xf0]  ;;  %v748_v40 = vor.u32 %v868_v35, %v747_v34  ;;  %v741_v45 = vld [vmem:[#allocation5 + $0x18] sm:$0xf0]  ;;  %s611_s7 = sshll.u32 %s608_s28, 4  ;;  %s612_s7 = int_to_ptr.hbm [resolvable:$true] %s611_s7 }
  0x40   : > { %567 = vmatpush.bf16.msra.mxu2 %v885_v30  ;;  %v884_v38 = vld [vmem:[#allocation8 + $0x28] sm:$0xff]  ;;  %v752_v41 = vor.u32 %v867_v36, %v749_v37  ;;  %v866_v43 = vld [vmem:[#allocation5 + $0x14] sm:$0xf0]  ;;  %v865_v44 = vld [vmem:[#allocation5 + $0x14] sm:$0xf]  ;;  %s597_s16 = scalar_lea.sflag [#allocation4], %s1330_s26 }
  0x41   : > { %402 = vmatpush.bf16.msra.mxu0 %v772_v16  ;;  %581 = vmatpush.bf16.msra.mxu3 %v893_v31  ;;  %v892_v39 = vld [vmem:[#allocation8 + $0x68] sm:$0xff]  ;;  %v883_v46 = vld [vmem:[#allocation8 + $0x20] sm:$0xff]  ;;  %v744_v49 = vor.u32 %v865_v44, %v741_v45  ;;  %v882_v59 = vld [vmem:[#allocation8 + $0x18] sm:$0xff]  ;;  %s1114_s22 = sshra.s32 %s612_s7, 4  ;;  %s1120_s8 = scalar_lea.hbm %s1395_s5, 32  ;;  %s1115_s22 = int_to_ptr.hbm [resolvable:$true] %s1114_s22 }
  0x42   : > { %416 = vmatpush.bf16.msra.mxu1 %v776_v17  ;;  %v739_v42 = vld [vmem:[#allocation5 + $0x10] sm:$0xf]  ;;  %v891_v47 = vld [vmem:[#allocation8 + $0x60] sm:$0xff]  ;;  %v733_v53 = vld [vmem:[#allocation5 + $0x8] sm:$0xf0]  ;;  %s1116_s17 = scalar_lea.hbm %s1115_s22, 16  ;;  %p1121_p11 = scmp.lt.s32.totalorder %s1115_s22, %s1395_s5 }
  0x43   : > { %v740_v48 = vor.u32 %v866_v43, %v739_v42  ;;  %v731_v50 = vld [vmem:[#allocation5] sm:$0xf]  ;;  %v864_v51 = vld [vmem:[#allocation5 + $0x4] sm:$0xf0]  ;;  %v863_v52 = vld [vmem:[#allocation5 + $0x4] sm:$0xf]  ;;  %p1117_p1 = scmp.ne.s32.totalorder %s1115_s22, %s1116_s17  ;;  %p1122_p9 = scmp.lt.s32.totalorder %s1120_s8, %s1116_s17 }
  0x44   : > { %568 = vmatpush.bf16.msra.mxu2 %v884_v38  ;;  %v732_v54 = vor.u32 %v864_v51, %v731_v50  ;;  %v295_v55 = vld [vmem:[%s1336_s14] sm:$0xff]  ;;  %v296_v56 = vld [vmem:[%s1336_s14 + $0x8] sm:$0xff]  ;;  %v736_v57 = vor.u32 %v863_v52, %v733_v53 }
  0x45   : > { %403 = vmatpush.bf16.msra.mxu0 %v764_v22  ;;  %582 = vmatpush.bf16.msra.mxu3 %v892_v39  ;;  %v297_v58 = vpack.c.bf16 %v296_v56, %v295_v55  ;;  %v890_v60 = vld [vmem:[#allocation8 + $0x58] sm:$0xff]  ;;  %v881_v61 = vld [vmem:[#allocation8 + $0x10] sm:$0xff]  ;;  %v880_v63 = vld [vmem:[#allocation8 + $0x8] sm:$0xff]  ;;  %p1118_p4 = pnand %p1117_p1, %p1300_p3  ;;  %p1123_p2 = por %p1122_p9, %p1121_p11 }
  0x46   : > { %417 = vmatpush.bf16.msra.mxu1 %v768_v25  ;;  %v889_v62 = vld [vmem:[#allocation8 + $0x50] sm:$0xff]  ;;  %v888_v0 = vld [vmem:[#allocation8 + $0x48] sm:$0xff]  ;;  %v879_v1 = vld [vmem:[#allocation8] sm:$0xff] }
  0x47   : > { %v887_v2 = vld [vmem:[#allocation8 + $0x40] sm:$0xff]  ;;  %v314_v3 = vld [vmem:[#allocation7] sm:$0x3]  ;;  %p1119_p8 = pneg %p1118_p4 }
  0x48   : > { %569 = vmatpush.bf16.msra.mxu2 %v883_v46  ;;  %v316_v6 = vperm.slane %v314_v3, 0  ;;  %v317_v7 = vperm.slane %v314_v3, 1  ;;  %v979_v20 = vld [vmem:[%s1394_s4] ss:$0 sm:$0xff] }
  0x49   : > { %404 = vmatpush.bf16.msra.mxu0 %v756_v32  ;;  %583 = vmatpush.bf16.msra.mxu3 %v891_v47  ;;  %p1124_p10 = pnand %p1123_p2, %p1119_p8 }
  0x4a   : > { %418 = vmatpush.bf16.msra.mxu1 %v760_v33 }
  0x4c   : > { %570 = vmatpush.bf16.msra.mxu2 %v882_v59 }
  0x4d   : > { %405 = vmatpush.bf16.msra.mxu0 %v748_v40  ;;  %584 = vmatpush.bf16.msra.mxu3 %v890_v60 }
  0x4e   : > { %419 = vmatpush.bf16.msra.mxu1 %v752_v41 }
  0x50   : > { %571 = vmatpush.bf16.msra.mxu2 %v881_v61 }
  0x51   : > { %406 = vmatpush.bf16.msra.mxu0 %v740_v48  ;;  %585 = vmatpush.bf16.msra.mxu3 %v889_v62 }
  0x52   : > { %420 = vmatpush.bf16.msra.mxu1 %v744_v49 }
  0x54   : > { %572 = vmatpush.bf16.msra.mxu2 %v880_v63 }
  0x55   : > { %407 = vmatpush.bf16.msra.mxu0 %v732_v54  ;;  %586 = vmatpush.bf16.msra.mxu3 %v888_v0 }
  0x56   : > { %421 = vmatpush.bf16.msra.mxu1 %v736_v57 }
  0x58   : > { %408 = vmatmul.bf16.vlgmr.msra.gmra.mxu0 %v297_v58  ;;  %573 = vmatpush.bf16.msra.mxu2 %v879_v1 }
  0x59   : > { %422 = vmatmul.bf16.vlgmr.msra.gmra.mxu1 %v297_v58  ;;  %587 = vmatpush.bf16.msra.mxu3 %v887_v2 }
  0xd5   : > { %v409_v4 = vpop.f32.mrf.mxu0 }
  0xd6   : > { %v423_v5 = vpop.f32.mrf.mxu1  ;;  %v410_v8 = vadd.f32 %v409_v4, %v316_v6 }
  0xd7   : > { %v424_v9 = vadd.f32 %v423_v5, %v317_v7 }
  0xd8   : > { %v428_v14 = vmax.f32 %v410_v8, 0.0 }
  0xd9   : > { %v429_v16 = vmax.f32 %v424_v9, 0.0 }
  0xdd   : > { %v411_v10 = vpop.f32.mrf.mxu0 }
  0xde   : > { %v412_v11 = vadd.f32 %v411_v10, %v316_v6  ;;  %v425_v12 = vpop.f32.mrf.mxu1 }
  0xdf   : > { %v426_v13 = vadd.f32 %v425_v12, %v317_v7 }
  0xe0   : > { %v430_v15 = vmax.f32 %v412_v11, 0.0 }
  0xe1   : > { %v431_v17 = vmax.f32 %v426_v13, 0.0 }
  0xe2   : > { %v432_v18 = vpack.c.bf16 %v430_v15, %v428_v14 }
  0xe3   : > { %v433_v19 = vpack.c.bf16 %v431_v17, %v429_v16 }
  0xe4   : > { %574 = vmatmul.bf16.vlgmr.msra.gmra.mxu2 %v432_v18 }
  0xe5   : > { %588 = vmatmul.bf16.vlgmr.msra.gmra.mxu3 %v433_v19 }
 0x167   : > { %v575_v21 = vpop.f32.mrf.mxu2 }
 0x168   : > { %v576_v22 = vadd.f32 %v979_v20, %v575_v21  ;;  %v589_v23 = vpop.f32.mrf.mxu3 }
 0x16a   : > { %v590_v24 = vadd.f32 %v589_v23, %v576_v22 }
 0x16c   : > { %594 = vst [vmem:[%s292_s6] sm:$0xff] %v590_v24 }
 0x16f   : > { %v577_v25 = vpop.f32.mrf.mxu2 }
 0x170   : > { %v578_v26 = vadd.f32 %v979_v20, %v577_v25  ;;  %v591_v27 = vpop.f32.mrf.mxu3 }
 0x172   : > { %v592_v28 = vadd.f32 %v591_v27, %v578_v26 }
 0x174   : > { %595 = vst [vmem:[%s292_s6 + $0x8] sm:$0xff] %v592_v28 }
 0x175   : > { %1127 = shalt.err (!%p1124_p10)
}
 0x176   : > { %s1183_s26 = smov 128   ;;  %s1184_s29 = smov 8  }
 0x177   : > { %910 = dma.vmem_to_hbm [thread:$0]  (%p1300_p3), %s610_s15, 256, %s612_s7, %s597_s16, %s1183_s26, %s1183_s26, %s1184_s29  }
 0x178 PF: > { %s626_s12 = sand.u32 1, %s1162_s18   ;;  %p1404_p12 = scmp.ge.s32.totalorder %s1174_s21, 2 }
 0x179   : > { %s627_s23 = scalar_lea.sflag [#allocation4], %s626_s12 }
 0x17a   : > { %p927_p13 = pnand %p1404_p12, %p1250_p6 }
 0x17c   : > { %p928_p0 = pneg %p927_p13 }
 0x17e   : > { %1157 = dma.done.wait (%p928_p0), %s627_s23, 256  }
 0x17f   : > { %1159 = vsyncadd (%p928_p0), %s627_s23, 4294967040  ;;  %p20_p5 = scmp.ge.s32.totalorder %s1287_s30, 4   ;;  %s1405_s18 = smov %s1166_s19 }
 0x180   : > { %s1406_s19 = smov %s1170_s20  ;;  %s1407_s20 = smov %s1296_s9 }
 0x181   : > { %s1408_s21 = smov %s1287_s30  ;;  %22 = sbr.rel (!%p20_p5) target bundleno = 7 (0x7), region = 97 }
 0x186   :  { %633 = vsyncpa [#allocation3], 1 }
 0x187   :  { %635 = vsyncpa [#allocation3 + $0x1], 1 }
 0x188   :  { %636 = vsyncpa [#allocation6], 1 }
 0x189   :  { %637 = vsyncpa [#allocation9], 1 }
 0x18a   :  { %638 = vsyncpa [#allocation4], 1 }
 0x18b   :  { %640 = vsyncpa [#allocation4 + $0x1], 1 }

</bundles_post_ra>
